<compile_context>
chip_gen: v5e
topology: v5e:2x2
jax: 0.10.0
libtpu: 0.0.40
codegen_flags: <defaults>
</compile_context>

<pallas_src>
import math

import jax
import jax.numpy as jnp
from jax.experimental import pallas as pl
from jax.experimental.pallas import tpu as pltpu

D_IN, D_H1, D_H2, D_OUT = 60, 64, 16, 2

TILE_B = 8192                          # batch rows per grid step (sweep 4096..8192)
VMEM_LIMIT_BYTES = 32 * 1024 * 1024    # raises v5e's 16 MiB default; == v6e/v7x default


def _mlp_kernel(h_ref, w1_ref, b1_ref, w2_ref, b2_ref, w3t_ref, b3t_ref, ot_ref):
    # One batch tile per grid step; the whole 3-layer MLP is fused in VMEM.
    x = h_ref[...]                                                       # [tb, 60]
    h1 = jnp.dot(x, w1_ref[...], preferred_element_type=jnp.float32) + b1_ref[...]
    h1 = jnp.maximum(h1, 0.0)                                            # [tb, 64]
    h2 = jnp.dot(h1, w2_ref[...], preferred_element_type=jnp.float32) + b2_ref[...]
    h2 = jnp.maximum(h2, 0.0)                                            # [tb, 16]
    # Final layer emitted transposed ([2, tb]; batch on the 128-lane axis) so the
    # output block is lane-dense: no masked vst.msk stores and a 64x smaller output
    # VMEM buffer than a [tb, 2] block.  The [tb,16] -> [16,tb] relayout rides the
    # XLU, which has plenty of slack in this DMA-bound kernel.
    out_t = jnp.dot(w3t_ref[...], h2.T, preferred_element_type=jnp.float32) + b3t_ref[...]
    ot_ref[...] = out_t.astype(ot_ref.dtype)                             # [2, tb]


def _round_up(x: int, m: int) -> int:
    return ((x + m - 1) // m) * m


def _pick_tile(B: int) -> int:
    """Batch tile: big enough to amortize per-step overhead, >=2 blocks for medium
    batches so v7x's two TensorCores both get work, and a multiple of 256 so the
    input block (tile, 60) and the transposed output block (2, tile) stay aligned
    to the (8, 128) tiling."""
    if B <= 1024:
        return B                       # single block; block == full array dims
    return min(TILE_B, max(512, _round_up(pl.cdiv(B, 2), 256)))


def mlp_bike_prediction(h, params):
    """h: [B, 60] float32.  params: dict of w1,b1,w2,b2,w3,b3 ([in, out] weights).
    Returns [B, 2] float32."""
    B = h.shape[0]
    w1, b1 = params["w1"], params["b1"]
    w2, b2 = params["w2"], params["b2"]
    w3, b3 = params["w3"], params["b3"]

    # Tiny one-time relayouts (<=128 bytes) so the kernel's last matmul is already
    # transposed.  NOT a transpose of the [B, 60] input (that would cost an HBM pass).
    w3t = w3.T                          # [2, 16]
    b3t = b3.reshape(1, D_OUT).T        # [2, 1]

    tile_b = _pick_tile(B)
    grid = (pl.cdiv(B, tile_b),)

    # Constant index_map keeps weights/biases VMEM-resident across grid steps.
    const_spec = lambda shape: pl.BlockSpec(shape, lambda i: (0,) * len(shape))

    weight_bytes = 4 * (w1.size + b1.size + w2.size + b2.size + w3.size + b3.size)
    cost = pl.CostEstimate(
        flops=2 * B * (D_IN * D_H1 + D_H1 * D_H2 + D_H2 * D_OUT),
        transcendentals=0,
        bytes_accessed=B * (D_IN + D_OUT) * 4 + weight_bytes,
    )

    out_t = pl.pallas_call(
        _mlp_kernel,
        out_shape=jax.ShapeDtypeStruct((D_OUT, B), jnp.float32),
        grid=grid,
        in_specs=[
            pl.BlockSpec((tile_b, D_IN), lambda i: (i, 0)),   # streamed batch tiles
            const_spec(w1.shape), const_spec(b1.shape),
            const_spec(w2.shape), const_spec(b2.shape),
            const_spec(w3t.shape), const_spec(b3t.shape),
        ],
        out_specs=pl.BlockSpec((D_OUT, tile_b), lambda i: (0, i)),  # lane-dense slab
        compiler_params=pltpu.CompilerParams(
            dimension_semantics=("parallel",),   # megacore sharding on v7x
            vmem_limit_bytes=VMEM_LIMIT_BYTES,
        ),
        cost_estimate=cost,
    )(h, w1, b1, w2, b2, w3t, b3t)

    # [2, B] -> [B, 2]: 16*B bytes of XLA work, negligible next to the 240*B-byte read.
    return out_t.T


def init_params(key):
    """Deterministic init mimicking PyTorch nn.Linear default (uniform +- 1/sqrt(fan_in))."""
    dims = [(D_IN, D_H1), (D_H1, D_H2), (D_H2, D_OUT)]
    params = {}
    keys = jax.random.split(key, 2 * len(dims))
    for i, (fan_in, fan_out) in enumerate(dims):
        bound = 1.0 / math.sqrt(fan_in)
        w = jax.random.uniform(keys[2 * i], (fan_in, fan_out), jnp.float32,
                               minval=-bound, maxval=bound)
        b = jax.random.uniform(keys[2 * i + 1], (1, fan_out), jnp.float32,
                               minval=-bound, maxval=bound)
        params[f"w{i+1}"] = w
        params[f"b{i+1}"] = b
    return params


def _reference(h, params):
    x = jnp.maximum(h @ params["w1"] + params["b1"], 0.0)
    x = jnp.maximum(x @ params["w2"] + params["b2"], 0.0)
    return x @ params["w3"] + params["b3"]


if __name__ == "__main__":
    key = jax.random.PRNGKey(0)
    pkey, xkey = jax.random.split(key)
    params = init_params(pkey)

    batch = 8
    h = jax.random.normal(xkey, (batch, D_IN), dtype=jnp.float32)

    out = mlp_bike_prediction(h, params)
    out = jax.block_until_ready(out)

    ref = _reference(h, params)
    assert out.shape == (batch, D_OUT), out.shape
    assert jnp.allclose(out, ref, atol=1e-4, rtol=1e-4), "mismatch vs reference"
    print("KERNEL_OK")
</pallas_src>

<mosaic_0001>
module attributes {stable_mosaic.version = 11 : i64} {
  func.func @_mlp_kernel(%arg0: i32, %arg1: memref<8x60xf32, #tpu.memory_space<vmem>>, %arg2: memref<60x64xf32, #tpu.memory_space<vmem>>, %arg3: memref<1x64xf32, #tpu.memory_space<vmem>>, %arg4: memref<64x16xf32, #tpu.memory_space<vmem>>, %arg5: memref<1x16xf32, #tpu.memory_space<vmem>>, %arg6: memref<2x16xf32, #tpu.memory_space<vmem>>, %arg7: memref<2x1xf32, #tpu.memory_space<vmem>>, %arg8: memref<2x8xf32, #tpu.memory_space<vmem>>) attributes {dimension_semantics = [#tpu.dimension_semantics<parallel>], iteration_bounds = array<i64: 1>, scalar_prefetch = 0 : i64, scratch_operands = 0 : i64, tpu.core_type = #tpu.core_type<tc>, window_params = [{transform_indices = @transform_0, window_bounds = array<i64: 8, 60>}, {pipeline_mode = #tpu.pipeline_mode<synchronous>, transform_indices = @transform_1, window_bounds = array<i64: 60, 64>}, {pipeline_mode = #tpu.pipeline_mode<synchronous>, transform_indices = @transform_2, window_bounds = array<i64: 1, 64>}, {pipeline_mode = #tpu.pipeline_mode<synchronous>, transform_indices = @transform_3, window_bounds = array<i64: 64, 16>}, {pipeline_mode = #tpu.pipeline_mode<synchronous>, transform_indices = @transform_4, window_bounds = array<i64: 1, 16>}, {pipeline_mode = #tpu.pipeline_mode<synchronous>, transform_indices = @transform_5, window_bounds = array<i64: 2, 16>}, {pipeline_mode = #tpu.pipeline_mode<synchronous>, transform_indices = @transform_6, window_bounds = array<i64: 2, 1>}, {transform_indices = @transform_7, window_bounds = array<i64: 2, 8>}]} {
    %c0 = arith.constant 0 : index
    %c0_0 = arith.constant 0 : index
    %0 = vector.load %arg1[%c0, %c0_0] : memref<8x60xf32, #tpu.memory_space<vmem>>, vector<8x60xf32>
    %c0_1 = arith.constant 0 : index
    %c0_2 = arith.constant 0 : index
    %1 = vector.load %arg2[%c0_1, %c0_2] : memref<60x64xf32, #tpu.memory_space<vmem>>, vector<60x64xf32>
    %cst = arith.constant dense<0.000000e+00> : vector<8x64xf32>
    %2 = tpu.matmul %0, %1, %cst {dimension_numbers = #tpu.dot_dimension_numbers<[1], [0], [0], [1], [0, 0, 1, 1], [], []>} : vector<8x60xf32>, vector<60x64xf32>, vector<8x64xf32> -> vector<8x64xf32>
    %c0_3 = arith.constant 0 : index
    %c0_4 = arith.constant 0 : index
    %3 = vector.load %arg3[%c0_3, %c0_4] : memref<1x64xf32, #tpu.memory_space<vmem>>, vector<1x64xf32>
    %4 = vector.broadcast %3 : vector<1x64xf32> to vector<8x64xf32>
    %5 = arith.addf %2, %4 : vector<8x64xf32>
    %cst_5 = arith.constant 0.000000e+00 : f32
    %6 = vector.broadcast %cst_5 : f32 to vector<8x64xf32>
    %7 = arith.maximumf %5, %6 : vector<8x64xf32>
    %c0_6 = arith.constant 0 : index
    %c0_7 = arith.constant 0 : index
    %8 = vector.load %arg4[%c0_6, %c0_7] : memref<64x16xf32, #tpu.memory_space<vmem>>, vector<64x16xf32>
    %cst_8 = arith.constant dense<0.000000e+00> : vector<8x16xf32>
    %9 = tpu.matmul %7, %8, %cst_8 {dimension_numbers = #tpu.dot_dimension_numbers<[1], [0], [0], [1], [0, 0, 1, 1], [], []>} : vector<8x64xf32>, vector<64x16xf32>, vector<8x16xf32> -> vector<8x16xf32>
    %c0_9 = arith.constant 0 : index
    %c0_10 = arith.constant 0 : index
    %10 = vector.load %arg5[%c0_9, %c0_10] : memref<1x16xf32, #tpu.memory_space<vmem>>, vector<1x16xf32>
    %11 = vector.broadcast %10 : vector<1x16xf32> to vector<8x16xf32>
    %12 = arith.addf %9, %11 : vector<8x16xf32>
    %cst_11 = arith.constant 0.000000e+00 : f32
    %13 = vector.broadcast %cst_11 : f32 to vector<8x16xf32>
    %14 = arith.maximumf %12, %13 : vector<8x16xf32>
    %c0_12 = arith.constant 0 : index
    %c0_13 = arith.constant 0 : index
    %15 = vector.load %arg6[%c0_12, %c0_13] : memref<2x16xf32, #tpu.memory_space<vmem>>, vector<2x16xf32>
    %16 = tpu.transpose %14, [1, 0] : vector<8x16xf32> -> vector<16x8xf32>
    %cst_14 = arith.constant dense<0.000000e+00> : vector<2x8xf32>
    %17 = tpu.matmul %15, %16, %cst_14 {dimension_numbers = #tpu.dot_dimension_numbers<[1], [0], [0], [1], [0, 0, 1, 1], [], []>} : vector<2x16xf32>, vector<16x8xf32>, vector<2x8xf32> -> vector<2x8xf32>
    %c0_15 = arith.constant 0 : index
    %c0_16 = arith.constant 0 : index
    %18 = vector.load %arg7[%c0_15, %c0_16] : memref<2x1xf32, #tpu.memory_space<vmem>>, vector<2x1xf32>
    %19 = vector.broadcast %18 : vector<2x1xf32> to vector<2x8xf32>
    %20 = arith.addf %17, %19 : vector<2x8xf32>
    %c0_17 = arith.constant 0 : index
    %c0_18 = arith.constant 0 : index
    %21 = vector.load %arg8[%c0_17, %c0_18] : memref<2x8xf32, #tpu.memory_space<vmem>>, vector<2x8xf32>
    tpu.vector_store %arg8[%c0_17, %c0_18], %20 {strides = array<i32>} : memref<2x8xf32, #tpu.memory_space<vmem>>, vector<2x8xf32>,
    return
  }
  func.func @transform_0(%arg0: i32) -> (i32, i32) {
    %c0_i32 = arith.constant 0 : i32
    %c0_i32_0 = arith.constant 0 : i32
    return %arg0, %c0_i32 : i32, i32
  }
  func.func @transform_1(%arg0: i32) -> (i32, i32) {
    %c0_i32 = arith.constant 0 : i32
    %c0_i32_0 = arith.constant 0 : i32
    %c0_i32_1 = arith.constant 0 : i32
    return %c0_i32, %c0_i32_0 : i32, i32
  }
  func.func @transform_2(%arg0: i32) -> (i32, i32) {
    %c0_i32 = arith.constant 0 : i32
    %c0_i32_0 = arith.constant 0 : i32
    %c0_i32_1 = arith.constant 0 : i32
    return %c0_i32, %c0_i32_0 : i32, i32
  }
  func.func @transform_3(%arg0: i32) -> (i32, i32) {
    %c0_i32 = arith.constant 0 : i32
    %c0_i32_0 = arith.constant 0 : i32
    %c0_i32_1 = arith.constant 0 : i32
    return %c0_i32, %c0_i32_0 : i32, i32
  }
  func.func @transform_4(%arg0: i32) -> (i32, i32) {
    %c0_i32 = arith.constant 0 : i32
    %c0_i32_0 = arith.constant 0 : i32
    %c0_i32_1 = arith.constant 0 : i32
    return %c0_i32, %c0_i32_0 : i32, i32
  }
  func.func @transform_5(%arg0: i32) -> (i32, i32) {
    %c0_i32 = arith.constant 0 : i32
    %c0_i32_0 = arith.constant 0 : i32
    %c0_i32_1 = arith.constant 0 : i32
    return %c0_i32, %c0_i32_0 : i32, i32
  }
  func.func @transform_6(%arg0: i32) -> (i32, i32) {
    %c0_i32 = arith.constant 0 : i32
    %c0_i32_0 = arith.constant 0 : i32
    %c0_i32_1 = arith.constant 0 : i32
    return %c0_i32, %c0_i32_0 : i32, i32
  }
  func.func @transform_7(%arg0: i32) -> (i32, i32) {
    %c0_i32 = arith.constant 0 : i32
    %c0_i32_0 = arith.constant 0 : i32
    return %c0_i32, %arg0 : i32, i32
  }
}

</mosaic_0001>

<bundles_post_ra>
// kernel: tpu_custom_call.1
= control target key start
LH: loop header
LB: loop body
LE: loop exit
PB: predicated region body
PF: predicated region fallthrough
CT: control target
= control target key end

     0   :  { %vm44_vm0 = vcmask 1043456   ;;  %s302_s0 = inlined_call_operand.vmem [shape: f32[8,60], index: 0, kind: input, shape index: {}]   ;;  %s303_s1 = inlined_call_operand.vmem [shape: f32[60,64], index: 1, kind: input, shape index: {}]   ;;  %s304_s2 = inlined_call_operand.vmem [shape: f32[1,64], index: 2, kind: input, shape index: {}]   ;;  %s305_s3 = inlined_call_operand.vmem [shape: f32[64,16], index: 3, kind: input, shape index: {}]   ;;  %s306_s4 = inlined_call_operand.vmem [shape: f32[1,16], index: 4, kind: input, shape index: {}]   ;;  %s307_s5 = inlined_call_operand.vmem [shape: f32[2,16], index: 5, kind: input, shape index: {}]   ;;  %s308_s6 = inlined_call_operand.vmem [shape: f32[2,1], index: 6, kind: input, shape index: {}]   ;;  %s309_s7 = inlined_call_operand.hbm [shape: f32[2,8], index: 7, kind: output, shape index: {}]  }
   0x1   :  { %v35_v0 = vld [vmem:[%s303_s1 + $0x38] sm:$0xf]  ;;  %v34_v1 = vld [vmem:[%s303_s1 + $0x30] sm:$0xff]  ;;  %v33_v2 = vld [vmem:[%s303_s1 + $0x28] sm:$0xff] }
   0x2   :  { %158 = vmatpush.msk.msra.mxu0 %vm44_vm0, %v35_v0  ;;  %v76_v3 = vld [vmem:[%s305_s3 + $0x38] sm:$0xff]  ;;  %v75_v4 = vld [vmem:[%s305_s3 + $0x30] sm:$0xff]  ;;  %v32_v5 = vld [vmem:[%s303_s1 + $0x20] sm:$0xff] }
   0x3   :  { %93 = vmatpush.msra.mxu1 %v76_v3  ;;  %v74_v6 = vld [vmem:[%s305_s3 + $0x28] sm:$0xff] }
   0x4   :  { %57 = vmatpush.msra.mxu0 %v34_v1 }
   0x6   :  { %58 = vmatpush.msra.mxu0 %v33_v2 }
   0x7   :  { %12 = vsyncpa [#allocation3], 0  ;;  %v31_v7 = vld [vmem:[%s303_s1 + $0x18] sm:$0xff]  ;;  %94 = vmatpush.msra.mxu1 %v75_v4  ;;  %v73_v8 = vld [vmem:[%s305_s3 + $0x20] sm:$0xff]  ;;  %vm40_vm1 = vcmask 490496   ;;  %vm81_vm2 = vcmask 523264  }
   0x8   :  { %59 = vmatpush.msra.mxu0 %v32_v5  ;;  %v30_v9 = vld [vmem:[%s303_s1 + $0x10] sm:$0xff]  ;;  %v72_v10 = vld [vmem:[%s305_s3 + $0x18] sm:$0xff]  ;;  %v29_v11 = vld [vmem:[%s303_s1 + $0x8] sm:$0xff]  ;;  %v194_v22 = vmov 0   ;;  %vm113_vm3 = vcmask 130048   ;;  %s195_s16 = smov [#allocation2]  }
   0x9   :  { %95 = vmatpush.msra.mxu1 %v74_v6  ;;  %v28_v12 = vld [vmem:[%s303_s1] sm:$0xff]  ;;  %v71_v14 = vld [vmem:[%s305_s3 + $0x10] sm:$0xff]  ;;  %v70_v15 = vld [vmem:[%s305_s3 + $0x8] sm:$0xff]  ;;  %165 = vset.pattern.permute.xlu0 %v194_v22  ;;  %s149_s19 = sshll.u32 %s309_s7, 4  ;;  %vm140_vm4 = vcmask 58368   ;;  %s150_s19 = int_to_ptr.hbm [resolvable:$true] %s149_s19 }
   0xa   :  { %60 = vmatpush.msra.mxu0 %v31_v7  ;;  %v27_v13 = vld [vmem:[%s302_s0] sm:$0xff] }
   0xb   :  { %96 = vmatpush.msra.mxu1 %v73_v8  ;;  %v69_v16 = vld [vmem:[%s305_s3] sm:$0xff] }
   0xc   :  { %61 = vmatpush.msra.mxu0 %v30_v9  ;;  %v166_v17 = vld [vmem:[%s304_s2] ss:$0 sm:$0xff] }
   0xd   :  { %97 = vmatpush.msra.mxu1 %v72_v10  ;;  %v107_v21 = vld [vmem:[%s308_s6] sm:$0x3]  ;;  %s147_s6 = sshll.u32 %s195_s16, 4  ;;  %s148_s6 = int_to_ptr.vmem [resolvable:$true] %s147_s6 }
   0xe   :  { %62 = vmatpush.msra.mxu0 %v29_v11  ;;  %110 = vperm.xlu0 %165, %v107_v21   ;;  %v167_v23 = vld [vmem:[%s306_s4] ss:$0 sm:$0xff] }
   0xf   :  { %98 = vmatpush.msra.mxu1 %v71_v14  ;;  %v106_v27 = vld [vmem:[%s307_s5] sm:$0x3] }
  0x10   :  { %63 = vmatpush.msra.mxu0 %v28_v12 }
  0x11   :  { %159 = vmatmul.msk.f32.vlgmr.msra.gmra.mxu0 %vm40_vm1, %v27_v13  ;;  %99 = vmatpush.msra.mxu1 %v70_v15 }
  0x13   :  { %100 = vmatpush.msra.mxu1 %v69_v16 }
  0x80   :  { %v111_v28 = vpop.permute.xlu0 %110 }
  0x8e   :  { %v65_v18 = vpop.f32.mrf.mxu0 }
  0x8f   :  { %v66_v19 = vadd.f32 %v166_v17, %v65_v18 }
  0x91   :  { %v68_v20 = vmax.f32 %v66_v19, 0.0 }
  0x93   :  { %160 = vmatmul.msk.f32.vlgmr.msra.gmra.mxu1 %vm81_vm2, %v68_v20 }
 0x110   :  { %v102_v24 = vpop.f32.mrf.mxu1 }
 0x111   :  { %v103_v25 = vadd.f32 %v167_v23, %v102_v24 }
 0x113   :  { %v105_v26 = vmax.f32 %v103_v25, 0.0 }
 0x115   :  { %161 = vmatpush.xpose.msk.msra.mxu2 %vm113_vm3, %v105_v26 }
 0x118   :  { %162 = vmatmul.msk.f32.vlgmr.msra.gmra.mxu2 %vm113_vm3, %v106_v27 }
 0x19b   :  { %v137_v29 = vpop.f32.mrf.mxu2 }
 0x19c   :  { %v138_v30 = vadd.f32 %v137_v29, %v111_v28 }
 0x19e   :  { %141 = vst.msk [vmem:[#allocation2] sm:$0x3] %vm140_vm4, %v138_v30 }
 0x19f   :  { %152 = dma.vmem_to_hbm [thread:$0]  %s148_s6, 32, %s150_s19, [#allocation3]  }
 0x1a0   :  { %192 = dma.done.wait [#allocation3], 32  }
 0x1a1   :  { %193 = vsyncadd [#allocation3], 4294967264 }
 0x1a2   :  { %157 = vsyncpa [#allocation3], 1 }

</bundles_post_ra>
